<compile_context>
chip_gen: v7x
topology: tpu7x:2x2x1
jax: 0.10.0
libtpu: 0.0.40
codegen_flags: <defaults>
</compile_context>

<pallas_src>
import functools
import math

import jax
import jax.numpy as jnp
import numpy as np
from jax.experimental import pallas as pl
from jax.experimental.pallas import tpu as pltpu

SCALE_WEIGHT = 0.5 ** 0.5


def _cdiv(a, b):
  return -(-a // b)


def stacked_cnn_kernel(x_ref, w_ref, b_ref, m_ref, o_ref, *,
                       num_layers, width):
  """One grid step = TN whole (b, w) columns, all layers fused.

  x_ref : (R=TN*H, C) f32  activations; rows are TN columns of H rows each
  w_ref : (L, K, C, 2C)    fused conv weights (cols [:C]='out', [C:]='gate')
  b_ref : (L, 1, 2C)  f32  fused bias
  m_ref : (K, R, 1)   f32  per-tap boundary mask (1.0 where shifted row valid)
  o_ref : (R, C)           output
  """
  R, C = x_ref.shape
  pad = width // 2
  x = x_ref[...].astype(jnp.float32)

  # TODO(synk): nn.Dropout is stochastic (training mode); eval-mode identity here.
  for l in range(num_layers):                       # static unroll over layers
    acc = jnp.zeros((R, 2 * C), jnp.float32)
    for kh in range(width):                         # static unroll over taps
      off = kh - pad                                # tap kh reads x[h + off]
      if off == 0:
        xs = x
      else:
        # roll runs on the XLU (overlaps the MXU); the mask zeroes rows whose
        # shifted source crossed a column boundary (the conv's zero padding).
        xs = pltpu.roll(x, shift=(-off) % R, axis=0) * m_ref[kh]
      acc = acc + jnp.dot(xs.astype(w_ref.dtype), w_ref[l, kh],
                          preferred_element_type=jnp.float32)
    acc = acc + b_ref[l]                            # (1, 2C) broadcasts over R
    out, gate = acc[:, :C], acc[:, C:]
    # GatedConv + residual + scale
    x = (x + out * jax.nn.sigmoid(gate)) * SCALE_WEIGHT

  o_ref[...] = x.astype(o_ref.dtype)


def _choose_tile_cols(n_cols, H, C, itemsize=4):
  """Columns per block: fill MXU M-dim, fit VMEM, keep >= 4 grid steps."""
  tn = max(1, _cdiv(256, H))                             # TN*H >= 256 MXU rows
  col_bytes = H * C * itemsize
  tn = min(tn, max(1, (16 << 20) // (4 * col_bytes)))    # 2x in + 2x out bufs
  tn = min(tn, max(1, _cdiv(n_cols, 4)))                 # megacore: >= 4 steps
  return max(1, min(tn, n_cols))


def stacked_cnn_forward(x_nchw, torch_w, torch_b, *, num_layers, width=3,
                        compute_dtype=jnp.float32):
  """Fused StackedCNN forward.

  x_nchw  : (B, C, H, W) float32        (PyTorch NCHW convention)
  torch_w : (L, 2C, C, K, 1) float32    (PyTorch Conv2d OIHW weight layout)
  torch_b : (L, 2C) float32
  compute_dtype : matmul operand dtype (jnp.bfloat16 recommended on v6e/v7x;
                  accumulation and elementwise math stay float32).
  """
  B, C, H, W = x_nchw.shape
  L, K = num_layers, width
  N = B * W

  # NCHW -> (B, W, H, C) -> (N, H, C); the (K,1) conv never mixes across N.
  x = jnp.transpose(x_nchw, (0, 3, 2, 1)).reshape(N, H, C)

  tn = _choose_tile_cols(N, H, C)
  n_pad = _cdiv(N, tn) * tn
  if n_pad != N:
    x = jnp.concatenate([x, jnp.zeros((n_pad - N, H, C), x.dtype)], axis=0)
  rows = tn * H
  x = x.reshape(n_pad * H, C)          # flat (rows, C); one block = tn columns

  # Fuse out/gate weights: (L,2C,C,K,1) -> (L,K,C,2C); cols [:C]='out', [C:]='gate'.
  w = jnp.transpose(torch_w[..., 0], (0, 3, 2, 1)).astype(compute_dtype)
  b = torch_b[:, None, :].astype(jnp.float32)            # (L, 1, 2C)

  # Per-tap boundary masks (rows whose shifted source leaves the column -> 0).
  pad = width // 2
  h_np = np.arange(rows) % H
  masks = np.stack(
      [((h_np + (kh - pad) >= 0) & (h_np + (kh - pad) < H)).astype(np.float32)
       for kh in range(width)])[..., None]               # (K, rows, 1)
  masks = jnp.asarray(masks)

  kernel = functools.partial(stacked_cnn_kernel, num_layers=L, width=K)

  # VMEM budget: double-buffered activation tiles + weights/bias/masks + slack.
  tile_bytes = rows * C * 4
  w_bytes = int(np.prod(w.shape)) * jnp.dtype(compute_dtype).itemsize
  vmem_limit = int(min(64 << 20,
                       max(32 << 20, 4 * tile_bytes + 2 * w_bytes + (8 << 20))))

  out = pl.pallas_call(
      kernel,
      out_shape=jax.ShapeDtypeStruct((n_pad * H, C), x_nchw.dtype),
      grid=(n_pad // tn,),
      in_specs=[
          pl.BlockSpec((rows, C), lambda n: (n, 0)),
          pl.BlockSpec((L, K, C, 2 * C), lambda n: (0, 0, 0, 0)),
          pl.BlockSpec((L, 1, 2 * C), lambda n: (0, 0, 0)),
          pl.BlockSpec((K, rows, 1), lambda n: (0, 0, 0)),
      ],
      out_specs=pl.BlockSpec((rows, C), lambda n: (n, 0)),
      compiler_params=pltpu.CompilerParams(
          dimension_semantics=("parallel",),
          vmem_limit_bytes=vmem_limit),
  )(x, w, b, masks)

  out = out.reshape(n_pad, H, C)[:N]
  return jnp.transpose(out.reshape(B, W, H, C), (0, 3, 2, 1))


def init_params(key, num_layers, input_size, width=3, dropout=0.2):
  """Deterministic init mimicking the PyTorch module's __init__ shapes/scales."""
  C = input_size
  gain = (4.0 * (1.0 - dropout)) ** 0.5
  fan_in = C * width * 1
  fan_out = 2 * C * width * 1
  w_bound = gain * math.sqrt(6.0 / (fan_in + fan_out))     # xavier_uniform_
  b_bound = 1.0 / math.sqrt(fan_in)                        # Conv2d default bias
  keys = jax.random.split(key, 2 * num_layers)
  ws, bs = [], []
  for l in range(num_layers):
    ws.append(jax.random.uniform(keys[2 * l], (2 * C, C, width, 1),
                                 jnp.float32, -w_bound, w_bound))
    bs.append(jax.random.uniform(keys[2 * l + 1], (2 * C,),
                                 jnp.float32, -b_bound, b_bound))
  return jnp.stack(ws), jnp.stack(bs)


def ref_forward(x, torch_w, torch_b, num_layers, width):
  """Pure-JAX reference (XLA conv) with identical semantics, for verification."""
  B, C, H, W = x.shape
  pad = width // 2
  for l in range(num_layers):
    y = jax.lax.conv_general_dilated(
        x, torch_w[l], window_strides=(1, 1),
        padding=((pad, pad), (0, 0)),
        dimension_numbers=("NCHW", "OIHW", "NCHW"))
    y = y + torch_b[l][None, :, None, None]
    out, gate = y[:, :C], y[:, C:]
    x = (x + out * jax.nn.sigmoid(gate)) * SCALE_WEIGHT
  return x


if __name__ == "__main__":
  # Shapes consistent with StackedCNN usage: (batch, hidden, seq, extra_dim)
  B, C, H, W = 2, 128, 16, 2
  NUM_LAYERS, WIDTH = 2, 3

  key = jax.random.PRNGKey(0)
  kx, kp = jax.random.split(key)
  x = jax.random.normal(kx, (B, C, H, W), dtype=jnp.float32)
  torch_w, torch_b = init_params(kp, NUM_LAYERS, C, width=WIDTH, dropout=0.2)

  y = stacked_cnn_forward(x, torch_w, torch_b,
                          num_layers=NUM_LAYERS, width=WIDTH)
  y = jax.block_until_ready(y)

  y_ref = ref_forward(x, torch_w, torch_b, NUM_LAYERS, WIDTH)
  assert y.shape == x.shape, (y.shape, x.shape)
  max_err = float(jnp.max(jnp.abs(y - y_ref)))
  assert jnp.allclose(y, y_ref, atol=1e-4, rtol=1e-4), max_err

  print("KERNEL_OK")
</pallas_src>

<mosaic_0001>
module attributes {stable_mosaic.version = 11 : i64} {
  func.func @stacked_cnn_kernel(%arg0: i32, %arg1: memref<16x128xf32, #tpu.memory_space<vmem>>, %arg2: memref<2x3x128x256xf32, #tpu.memory_space<vmem>>, %arg3: memref<2x1x256xf32, #tpu.memory_space<vmem>>, %arg4: memref<3x16x1xf32, #tpu.memory_space<vmem>>, %arg5: memref<16x128xf32, #tpu.memory_space<vmem>>) attributes {dimension_semantics = [#tpu.dimension_semantics<parallel>], iteration_bounds = array<i64: 4>, scalar_prefetch = 0 : i64, scratch_operands = 0 : i64, tpu.core_type = #tpu.core_type<tc>, window_params = [{transform_indices = @transform_0, window_bounds = array<i64: 16, 128>}, {pipeline_mode = #tpu.pipeline_mode<synchronous>, transform_indices = @transform_1, window_bounds = array<i64: 2, 3, 128, 256>}, {pipeline_mode = #tpu.pipeline_mode<synchronous>, transform_indices = @transform_2, window_bounds = array<i64: 2, 1, 256>}, {pipeline_mode = #tpu.pipeline_mode<synchronous>, transform_indices = @transform_3, window_bounds = array<i64: 3, 16, 1>}, {transform_indices = @transform_4, window_bounds = array<i64: 16, 128>}]} {
    %c0 = arith.constant 0 : index
    %c0_0 = arith.constant 0 : index
    %0 = vector.load %arg1[%c0, %c0_0] : memref<16x128xf32, #tpu.memory_space<vmem>>, vector<16x128xf32>
    %cst = arith.constant 0.000000e+00 : f32
    %1 = vector.broadcast %cst : f32 to vector<16x256xf32>
    %c1_i32 = arith.constant 1 : i32
    %2 = tpu.dynamic_rotate %0 by %c1_i32 dim 0 : vector<16x128xf32>, i32 -> vector<16x128xf32>
    %c0_1 = arith.constant 0 : index
    %c0_2 = arith.constant 0 : index
    %c0_3 = arith.constant 0 : index
    %3 = vector.load %arg4[%c0_1, %c0_2, %c0_3] : memref<3x16x1xf32, #tpu.memory_space<vmem>>, vector<1x16x1xf32>
    %4 = vector.shape_cast %3 : vector<1x16x1xf32> to vector<16x1xf32>
    %5 = vector.broadcast %4 : vector<16x1xf32> to vector<16x128xf32>
    %6 = arith.mulf %2, %5 : vector<16x128xf32>
    %c0_4 = arith.constant 0 : index
    %c0_5 = arith.constant 0 : index
    %c0_6 = arith.constant 0 : index
    %c0_7 = arith.constant 0 : index
    %7 = vector.load %arg2[%c0_4, %c0_5, %c0_6, %c0_7] : memref<2x3x128x256xf32, #tpu.memory_space<vmem>>, vector<1x1x128x256xf32>
    %8 = vector.shape_cast %7 : vector<1x1x128x256xf32> to vector<128x256xf32>
    %cst_8 = arith.constant dense<0.000000e+00> : vector<16x256xf32>
    %9 = tpu.matmul %6, %8, %cst_8 {dimension_numbers = #tpu.dot_dimension_numbers<[1], [0], [0], [1], [0, 0, 1, 1], [], []>} : vector<16x128xf32>, vector<128x256xf32>, vector<16x256xf32> -> vector<16x256xf32>
    %10 = arith.addf %1, %9 : vector<16x256xf32>
    %c0_9 = arith.constant 0 : index
    %c1 = arith.constant 1 : index
    %c0_10 = arith.constant 0 : index
    %c0_11 = arith.constant 0 : index
    %11 = vector.load %arg2[%c0_9, %c1, %c0_10, %c0_11] : memref<2x3x128x256xf32, #tpu.memory_space<vmem>>, vector<1x1x128x256xf32>
    %12 = vector.shape_cast %11 : vector<1x1x128x256xf32> to vector<128x256xf32>
    %cst_12 = arith.constant dense<0.000000e+00> : vector<16x256xf32>
    %13 = tpu.matmul %0, %12, %cst_12 {dimension_numbers = #tpu.dot_dimension_numbers<[1], [0], [0], [1], [0, 0, 1, 1], [], []>} : vector<16x128xf32>, vector<128x256xf32>, vector<16x256xf32> -> vector<16x256xf32>
    %14 = arith.addf %10, %13 : vector<16x256xf32>
    %c15_i32 = arith.constant 15 : i32
    %15 = tpu.dynamic_rotate %0 by %c15_i32 dim 0 : vector<16x128xf32>, i32 -> vector<16x128xf32>
    %c2 = arith.constant 2 : index
    %c0_13 = arith.constant 0 : index
    %c0_14 = arith.constant 0 : index
    %16 = vector.load %arg4[%c2, %c0_13, %c0_14] : memref<3x16x1xf32, #tpu.memory_space<vmem>>, vector<1x16x1xf32>
    %17 = vector.shape_cast %16 : vector<1x16x1xf32> to vector<16x1xf32>
    %18 = vector.broadcast %17 : vector<16x1xf32> to vector<16x128xf32>
    %19 = arith.mulf %15, %18 : vector<16x128xf32>
    %c0_15 = arith.constant 0 : index
    %c2_16 = arith.constant 2 : index
    %c0_17 = arith.constant 0 : index
    %c0_18 = arith.constant 0 : index
    %20 = vector.load %arg2[%c0_15, %c2_16, %c0_17, %c0_18] : memref<2x3x128x256xf32, #tpu.memory_space<vmem>>, vector<1x1x128x256xf32>
    %21 = vector.shape_cast %20 : vector<1x1x128x256xf32> to vector<128x256xf32>
    %cst_19 = arith.constant dense<0.000000e+00> : vector<16x256xf32>
    %22 = tpu.matmul %19, %21, %cst_19 {dimension_numbers = #tpu.dot_dimension_numbers<[1], [0], [0], [1], [0, 0, 1, 1], [], []>} : vector<16x128xf32>, vector<128x256xf32>, vector<16x256xf32> -> vector<16x256xf32>
    %23 = arith.addf %14, %22 : vector<16x256xf32>
    %c0_20 = arith.constant 0 : index
    %c0_21 = arith.constant 0 : index
    %c0_22 = arith.constant 0 : index
    %24 = vector.load %arg3[%c0_20, %c0_21, %c0_22] : memref<2x1x256xf32, #tpu.memory_space<vmem>>, vector<1x1x256xf32>
    %25 = vector.shape_cast %24 : vector<1x1x256xf32> to vector<1x256xf32>
    %26 = vector.broadcast %25 : vector<1x256xf32> to vector<16x256xf32>
    %27 = arith.addf %23, %26 : vector<16x256xf32>
    %28 = vector.extract_strided_slice %27 {offsets = [0, 0], sizes = [16, 128], strides = [1, 1]} : vector<16x256xf32> to vector<16x128xf32>
    %29 = vector.extract_strided_slice %27 {offsets = [0, 128], sizes = [16, 128], strides = [1, 1]} : vector<16x256xf32> to vector<16x128xf32>
    %30 = arith.negf %29 : vector<16x128xf32>
    %31 = math.exp %30 : vector<16x128xf32>
    %cst_23 = arith.constant 1.000000e+00 : f32
    %32 = vector.broadcast %cst_23 : f32 to vector<16x128xf32>
    %33 = arith.addf %32, %31 : vector<16x128xf32>
    %34 = arith.divf %32, %33 : vector<16x128xf32>
    %35 = arith.mulf %28, %34 : vector<16x128xf32>
    %36 = arith.addf %0, %35 : vector<16x128xf32>
    %cst_24 = arith.constant 0.707106769 : f32
    %37 = vector.broadcast %cst_24 : f32 to vector<16x128xf32>
    %38 = arith.mulf %36, %37 : vector<16x128xf32>
    %cst_25 = arith.constant 0.000000e+00 : f32
    %39 = vector.broadcast %cst_25 : f32 to vector<16x256xf32>
    %c1_i32_26 = arith.constant 1 : i32
    %40 = tpu.dynamic_rotate %38 by %c1_i32_26 dim 0 : vector<16x128xf32>, i32 -> vector<16x128xf32>
    %c0_27 = arith.constant 0 : index
    %c0_28 = arith.constant 0 : index
    %c0_29 = arith.constant 0 : index
    %41 = vector.load %arg4[%c0_27, %c0_28, %c0_29] : memref<3x16x1xf32, #tpu.memory_space<vmem>>, vector<1x16x1xf32>
    %42 = vector.shape_cast %41 : vector<1x16x1xf32> to vector<16x1xf32>
    %43 = vector.broadcast %42 : vector<16x1xf32> to vector<16x128xf32>
    %44 = arith.mulf %40, %43 : vector<16x128xf32>
    %c1_30 = arith.constant 1 : index
    %c0_31 = arith.constant 0 : index
    %c0_32 = arith.constant 0 : index
    %c0_33 = arith.constant 0 : index
    %45 = vector.load %arg2[%c1_30, %c0_31, %c0_32, %c0_33] : memref<2x3x128x256xf32, #tpu.memory_space<vmem>>, vector<1x1x128x256xf32>
    %46 = vector.shape_cast %45 : vector<1x1x128x256xf32> to vector<128x256xf32>
    %cst_34 = arith.constant dense<0.000000e+00> : vector<16x256xf32>
    %47 = tpu.matmul %44, %46, %cst_34 {dimension_numbers = #tpu.dot_dimension_numbers<[1], [0], [0], [1], [0, 0, 1, 1], [], []>} : vector<16x128xf32>, vector<128x256xf32>, vector<16x256xf32> -> vector<16x256xf32>
    %48 = arith.addf %39, %47 : vector<16x256xf32>
    %c1_35 = arith.constant 1 : index
    %c1_36 = arith.constant 1 : index
    %c0_37 = arith.constant 0 : index
    %c0_38 = arith.constant 0 : index
    %49 = vector.load %arg2[%c1_35, %c1_36, %c0_37, %c0_38] : memref<2x3x128x256xf32, #tpu.memory_space<vmem>>, vector<1x1x128x256xf32>
    %50 = vector.shape_cast %49 : vector<1x1x128x256xf32> to vector<128x256xf32>
    %cst_39 = arith.constant dense<0.000000e+00> : vector<16x256xf32>
    %51 = tpu.matmul %38, %50, %cst_39 {dimension_numbers = #tpu.dot_dimension_numbers<[1], [0], [0], [1], [0, 0, 1, 1], [], []>} : vector<16x128xf32>, vector<128x256xf32>, vector<16x256xf32> -> vector<16x256xf32>
    %52 = arith.addf %48, %51 : vector<16x256xf32>
    %c15_i32_40 = arith.constant 15 : i32
    %53 = tpu.dynamic_rotate %38 by %c15_i32_40 dim 0 : vector<16x128xf32>, i32 -> vector<16x128xf32>
    %c2_41 = arith.constant 2 : index
    %c0_42 = arith.constant 0 : index
    %c0_43 = arith.constant 0 : index
    %54 = vector.load %arg4[%c2_41, %c0_42, %c0_43] : memref<3x16x1xf32, #tpu.memory_space<vmem>>, vector<1x16x1xf32>
    %55 = vector.shape_cast %54 : vector<1x16x1xf32> to vector<16x1xf32>
    %56 = vector.broadcast %55 : vector<16x1xf32> to vector<16x128xf32>
    %57 = arith.mulf %53, %56 : vector<16x128xf32>
    %c1_44 = arith.constant 1 : index
    %c2_45 = arith.constant 2 : index
    %c0_46 = arith.constant 0 : index
    %c0_47 = arith.constant 0 : index
    %58 = vector.load %arg2[%c1_44, %c2_45, %c0_46, %c0_47] : memref<2x3x128x256xf32, #tpu.memory_space<vmem>>, vector<1x1x128x256xf32>
    %59 = vector.shape_cast %58 : vector<1x1x128x256xf32> to vector<128x256xf32>
    %cst_48 = arith.constant dense<0.000000e+00> : vector<16x256xf32>
    %60 = tpu.matmul %57, %59, %cst_48 {dimension_numbers = #tpu.dot_dimension_numbers<[1], [0], [0], [1], [0, 0, 1, 1], [], []>} : vector<16x128xf32>, vector<128x256xf32>, vector<16x256xf32> -> vector<16x256xf32>
    %61 = arith.addf %52, %60 : vector<16x256xf32>
    %c1_49 = arith.constant 1 : index
    %c0_50 = arith.constant 0 : index
    %c0_51 = arith.constant 0 : index
    %62 = vector.load %arg3[%c1_49, %c0_50, %c0_51] : memref<2x1x256xf32, #tpu.memory_space<vmem>>, vector<1x1x256xf32>
    %63 = vector.shape_cast %62 : vector<1x1x256xf32> to vector<1x256xf32>
    %64 = vector.broadcast %63 : vector<1x256xf32> to vector<16x256xf32>
    %65 = arith.addf %61, %64 : vector<16x256xf32>
    %66 = vector.extract_strided_slice %65 {offsets = [0, 0], sizes = [16, 128], strides = [1, 1]} : vector<16x256xf32> to vector<16x128xf32>
    %67 = vector.extract_strided_slice %65 {offsets = [0, 128], sizes = [16, 128], strides = [1, 1]} : vector<16x256xf32> to vector<16x128xf32>
    %68 = arith.negf %67 : vector<16x128xf32>
    %69 = math.exp %68 : vector<16x128xf32>
    %cst_52 = arith.constant 1.000000e+00 : f32
    %70 = vector.broadcast %cst_52 : f32 to vector<16x128xf32>
    %71 = arith.addf %70, %69 : vector<16x128xf32>
    %72 = arith.divf %70, %71 : vector<16x128xf32>
    %73 = arith.mulf %66, %72 : vector<16x128xf32>
    %74 = arith.addf %38, %73 : vector<16x128xf32>
    %cst_53 = arith.constant 0.707106769 : f32
    %75 = vector.broadcast %cst_53 : f32 to vector<16x128xf32>
    %76 = arith.mulf %74, %75 : vector<16x128xf32>
    %c0_54 = arith.constant 0 : index
    %c0_55 = arith.constant 0 : index
    %77 = vector.load %arg5[%c0_54, %c0_55] : memref<16x128xf32, #tpu.memory_space<vmem>>, vector<16x128xf32>
    tpu.vector_store %arg5[%c0_54, %c0_55], %76 {strides = array<i32>} : memref<16x128xf32, #tpu.memory_space<vmem>>, vector<16x128xf32>,
    return
  }
  func.func @transform_0(%arg0: i32) -> (i32, i32) {
    %c0_i32 = arith.constant 0 : i32
    %c0_i32_0 = arith.constant 0 : i32
    return %arg0, %c0_i32 : i32, i32
  }
  func.func @transform_1(%arg0: i32) -> (i32, i32, i32, i32) {
    %c0_i32 = arith.constant 0 : i32
    %c0_i32_0 = arith.constant 0 : i32
    %c0_i32_1 = arith.constant 0 : i32
    %c0_i32_2 = arith.constant 0 : i32
    %c0_i32_3 = arith.constant 0 : i32
    return %c0_i32, %c0_i32_0, %c0_i32_1, %c0_i32_2 : i32, i32, i32, i32
  }
  func.func @transform_2(%arg0: i32) -> (i32, i32, i32) {
    %c0_i32 = arith.constant 0 : i32
    %c0_i32_0 = arith.constant 0 : i32
    %c0_i32_1 = arith.constant 0 : i32
    %c0_i32_2 = arith.constant 0 : i32
    return %c0_i32, %c0_i32_0, %c0_i32_1 : i32, i32, i32
  }
  func.func @transform_3(%arg0: i32) -> (i32, i32, i32) {
    %c0_i32 = arith.constant 0 : i32
    %c0_i32_0 = arith.constant 0 : i32
    %c0_i32_1 = arith.constant 0 : i32
    %c0_i32_2 = arith.constant 0 : i32
    return %c0_i32, %c0_i32_0, %c0_i32_1 : i32, i32, i32
  }
  func.func @transform_4(%arg0: i32) -> (i32, i32) {
    %c0_i32 = arith.constant 0 : i32
    %c0_i32_0 = arith.constant 0 : i32
    return %arg0, %c0_i32 : i32, i32
  }
}

</mosaic_0001>

<bundles_post_ra>
// kernel: tpu_custom_call.1
= control target key start
LH: loop header
LB: loop body
LE: loop exit
PB: predicated region body
PF: predicated region fallthrough
CT: control target
= control target key end

     0   :  { %9 = vsyncpa [#allocation3], 0  ;;  %s1905_s0 = inlined_call_operand.hbm [shape: f32[64,128], index: 0, kind: input, shape index: {}]   ;;  %s1906_s1 = inlined_call_operand.hbm [shape: f32[2,3,128,256], index: 1, kind: input, shape index: {}]   ;;  %s1907_s2 = inlined_call_operand.vmem [shape: f32[2,1,256], index: 2, kind: input, shape index: {}]   ;;  %s1908_s3 = inlined_call_operand.vmem [shape: f32[3,16,1], index: 3, kind: input, shape index: {}]   ;;  %s1909_s4 = inlined_call_operand.hbm [shape: f32[64,128], index: 4, kind: output, shape index: {}]  }
   0x1   :  { %11 = vsyncpa [#allocation3 + $0x1], 0 }
   0x2   :  { %12 = vsyncpa [#allocation6], 0 }
   0x3   :  { %13 = vsyncpa [#allocation4], 0 }
   0x4   :  { %15 = vsyncpa [#allocation4 + $0x1], 0  ;;  %s1605_s15 = smov 0   ;;  %s1607_s16 = smov 0  }
   0x5   :  { %s1609_s17 = smov 0   ;;  %s1611_s18 = smov 0  }
   0x6 LB: > { %s1626_s19 = sadd.s32 4294967295, %s1567_s18   ;;  %s1123_s20 = sadd.s32 4294967294, %s1567_s18   ;;  %s1567_s18 = sphi %s1611_s18, %s1928_s18   ;;  %s1563_s17 = sphi %s1609_s17, %s1927_s17   ;;  %s1559_s16 = sphi %s1607_s16, %s1926_s16   ;;  %s1555_s15 = sphi %s1605_s15, %s1925_s15  }
   0x7   : > { %p41_p0 = scmp.ne.s32.totalorder %s1559_s16, %s1555_s15  ;;  %p1910_p1 = scmp.eq.s32.totalorder %s1626_s19, 0 }
   0x8   : > { %p134_p3 = scmp.eq.s32.totalorder %s1123_s20, 3  ;;  %p1124_p5 = scmp.ge.s32.totalorder %s1567_s18, 1 }
   0x9   : > { %p1635_p4 = por %p1910_p1, %p41_p0  ;;  %p141_p7 = scmp.lt.s32.totalorder %s1567_s18, 5 }
   0xa   : > { %p1640_p6 = por %p134_p3, %p41_p0  ;;  %s1569_s24 = smov [#allocation5]  }
   0xb   : > { %s1913_s21 = scalar_select %p1635_p4, 1, 0 }
   0xc   : > { %s1914_s22 = scalar_select %p1640_p6, 1, 0 }
   0xd   : > { %p1645_p8 = pnand %p1124_p5, %p141_p7  ;;  %s153_s25 = sshll.u32 %s1569_s24, 4  ;;  %s154_s25 = int_to_ptr.vmem [resolvable:$true] %s153_s25 }
   0xe   : > { %s1658_s27 = sadd.s32 1, %s1567_s18   ;;  %s28_s28 = sadd.s32 1, %s1563_s17 }
   0xf   : > { %s1915_s23 = scalar_select %p1645_p8, 1, 0 }
  0x10   : > { %p1364_p9 = pneg %p1645_p8  ;;  %s25_s29 = ssub.s32 %s1567_s18, %s1658_s27 }
  0x11   : > { %s1439_s6 = scalar_lea.hbm %s1906_s1, 24576 }
  0x12   : > { %p1653_p10 = pnand %p1364_p9, %p1910_p1  ;;  %p1440_p11 = scmp.ne.s32.totalorder %s1906_s1, %s1439_s6 }
  0x13   : > { %p1446_p3 = scmp.lt.u32.totalorder %s1439_s6, %s1906_s1 }
  0x14   : > { %p1441_p12 = pneg %p1653_p10 }
  0x16   : > { %p1442_p13 = pnand %p1441_p12, %p1440_p11 }
  0x18   : > { %p1443_p0 = pneg %p1442_p13 }
  0x1a   : > { %p1448_p5 = pnand %p1446_p3, %p1443_p0 }
  0x1c   : > { %1451 = shalt.err (!%p1448_p5)
}
  0x1d   : > { %s1452_s11 = scalar_lea.vmem %s154_s25, 24576  ;;  %p1460_p2 = scmp.lt.s32.totalorder %s154_s25, %s154_s25 }
  0x1e   : > { %p1453_p7 = scmp.ne.s32.totalorder %s154_s25, %s1452_s11  ;;  %p1461_p6 = scmp.lt.s32.totalorder %s1452_s11, %s1452_s11 }
  0x20   : > { %p1455_p9 = pnand %p1453_p7, %p1441_p12  ;;  %p1462_p4 = por %p1461_p6, %p1460_p2 }
  0x22   : > { %p1456_p1 = pneg %p1455_p9 }
  0x24   : > { %p1463_p8 = pnand %p1462_p4, %p1456_p1 }
  0x26   : > { %1466 = shalt.err (!%p1463_p8)
}
  0x27   : > { %s1570_s12 = smov 256   ;;  %s1571_s13 = smov 16  }
  0x28   : > { %1367 = dma.hbm_to_vmem [thread:$0]  (!%p1653_p10), %s1906_s1, 24576, %s154_s25, [#allocation6], %s1570_s12, %s1570_s12, %s1571_s13  }
  0x29   : > { %p26_p11 = scmp.eq.s32.totalorder %s25_s29, 0  ;;  %p35_p2 = scmp.ne.s32.totalorder %s1563_s17, %s1559_s16 }
  0x2a   : > { %p36_p1 = scmp.eq.s32.totalorder %s1567_s18, 0  ;;  %p1377_p4 = scmp.lt.s32.totalorder %s1567_s18, 4 }
  0x2b   : > { %s1684_s24 = scalar_select %p26_p11, %s1563_s17, %s28_s28  }
  0x2c   : > { %p37_p6 = por %p36_p1, %p35_p2  ;;  %p1917_p8 = scmp.eq.s32.totalorder %s1626_s19, 3 }
  0x2d   : > { %s173_s5 = sand.u32 1, %s1563_s17   ;;  %s1146_s6 = sshll.u32 %s1567_s18, 8 }
  0x2e   : > { %p1688_p12 = por %p1917_p8, %p35_p2  ;;  %s1127_s7 = sshll.u32 %s173_s5, 4 }
  0x2f   : > { %s1697_s9 = scalar_lea.hbm %s1905_s0, %s1146_s6  ;;  %s177_s25 = scalar_lea.vmem [#allocation2], %s1127_s7 }
  0x30   : > { %s184_s28 = sshll.u32 %s177_s25, 4  ;;  %p1699_p10 = pnand %p1377_p4, %p37_p6  ;;  %s1703_s28 = int_to_ptr.vmem [resolvable:$true] %s184_s28 }
  0x31   : > { %s1705_s10 = scalar_lea.sflag [#allocation3], %s173_s5  ;;  %s1467_s11 = scalar_lea.hbm %s1697_s9, 256 }
  0x32   : > { %p1468_p13 = scmp.ne.s32.totalorder %s1697_s9, %s1467_s11  ;;  %p1469_p0 = pneg %p1699_p10 }
  0x33   : > { %s1472_s14 = scalar_lea.hbm %s1905_s0, 1024  ;;  %p1473_p7 = scmp.lt.u32.totalorder %s1697_s9, %s1905_s0 }
  0x34   : > { %p1470_p3 = pnand %p1469_p0, %p1468_p13  ;;  %p1474_p9 = scmp.lt.u32.totalorder %s1472_s14, %s1467_s11 }
  0x35   : > { %p1476_p2 = scmp.lt.u32.totalorder %s1467_s11, %s1697_s9 }
  0x36   : > { %p1471_p5 = pneg %p1470_p3  ;;  %p1475_p11 = por %p1474_p9, %p1473_p7 }
  0x38   : > { %p1477_p1 = por %p1476_p2, %p1475_p11 }
  0x3a   : > { %p1478_p4 = pnand %p1477_p1, %p1471_p5 }
  0x3c   : > { %1481 = shalt.err (!%p1478_p4)
}
  0x3d   : > { %s1482_s5 = scalar_lea.vmem %s1703_s28, 256  ;;  %s1572_s7 = smov [#allocation2]  }
  0x3e   : > { %p1483_p6 = scmp.ne.s32.totalorder %s1703_s28, %s1482_s5  ;;  %s1487_s26 = sshll.u32 %s1572_s7, 4  ;;  %s1488_s26 = int_to_ptr.vmem [resolvable:$false] %s1487_s26 }
  0x3f   : > { %s1489_s8 = scalar_lea.vmem %s1488_s26, 512  ;;  %p1490_p3 = scmp.lt.s32.totalorder %s1703_s28, %s1488_s26 }
  0x40   : > { %p1485_p8 = pnand %p1483_p6, %p1469_p0  ;;  %p1491_p7 = scmp.lt.s32.totalorder %s1489_s8, %s1482_s5 }
  0x42   : > { %p1486_p13 = pneg %p1485_p8  ;;  %p1492_p9 = por %p1491_p7, %p1490_p3 }
  0x44   : > { %p1493_p11 = pnand %p1492_p9, %p1486_p13 }
  0x46   : > { %1496 = shalt.err (!%p1493_p11)
}
  0x47   : > { %s1573_s25 = smov 128   ;;  %s1574_s11 = smov 8  }
  0x48   : > { %1371 = dma.hbm_to_vmem [thread:$0]  (!%p1699_p10), %s1697_s9, 256, %s1703_s28, %s1705_s10, %s1573_s25, %s1573_s25, %s1574_s11  }
  0x49   : > { %p1920_p0 = scmp.ne.s32.totalorder %s1915_s23, 0 }
  0x4a   : > { %s1736_s12 = sand.u32 (!%p1920_p0), 1, %s1559_s16   ;;  %p1921_p5 = scmp.ne.s32.totalorder (!%p1920_p0), %s1913_s21, 0 }
  0x4b   : > { %196 = sbr.rel (%p1920_p0) target bundleno = 828 (0x33c), region = 36  ;;  %s1131_s13 = sshll.u32 (!%p1920_p0), %s1736_s12, 4 }
  0x4c   : > { %s199_s14 = scalar_lea.sflag (!%p1920_p0), [#allocation3], %s1736_s12  ;;  %s1742_s20 = scalar_lea.vmem (!%p1920_p0), [#allocation2], %s1131_s13 }
  0x52   : > { %1542 = dma.done.wait (%p1921_p5), %s199_s14, 256  }
  0x53   : > { %1544 = vsyncadd (%p1921_p5), %s199_s14, 4294967040  ;;  %p1922_p10 = scmp.eq.s32.totalorder %s1626_s19, 0 }
  0x55   : > { %1546 = dma.done.wait (%p1922_p10), [#allocation6], 24576   ;;  %p1923_p2 = pmov %p1922_p10 }
  0x56   : > { %v1575_v0 = vmov 0   ;;  %v1576_v1 = vmov 0.0   ;;  %v242_v2 = vld [vmem:[%s1908_s3] sm:$0xff]  ;;  %v243_v3 = vld [vmem:[%s1908_s3 + $0x8] sm:$0xff]  ;;  %v292_v7 = vld [vmem:[#allocation5 + $0x118] sm:$0xff]  ;;  %s1147_s11 = sshll.u32 %s1626_s19, 8 }
  0x57   : > { %1548 = vsyncadd (%p1923_p2), [#allocation6], 4294942720  ;;  %1421 = vset.pattern.permute.xlu0 %v1575_v0  ;;  %1422 = vset.pattern.permute.xlu1 %v1575_v0  ;;  %v1134_v4 = vld [vmem:[%s1908_s3 + $0x20] sm:$0xff]  ;;  %v1135_v5 = vld [vmem:[%s1908_s3 + $0x28] sm:$0xff]  ;;  %s230_s14 = scalar_lea.vmem [#allocation7], %s1131_s13  ;;  %s1860_s21 = scalar_lea.hbm %s1909_s4, %s1147_s11 }
  0x58   : > { %385 = vmatprep.mubr.f32.mxu0 %v1576_v1  ;;  %779 = vmatprep.mubr.f32.mxu1 %v1576_v1  ;;  %v290_v6 = vld [vmem:[#allocation5 + $0x108] sm:$0xff]  ;;  %v289_v9 = vld [vmem:[#allocation5 + $0x100] sm:$0xff]  ;;  %v291_v10 = vld [vmem:[#allocation5 + $0x110] sm:$0xff]  ;;  %s1027_s28 = scalar_lea.sflag [#allocation4], %s1736_s12  ;;  %s1577_s13 = smov [#allocation7]  }
  0x59   : > { %246 = vperm.xlu0 %1421, %v242_v2   ;;  %485 = vperm.xlu1 %1422, %v1134_v4   ;;  %v1148_v8 = vpack.c.bf16 %v292_v7, %v290_v6  ;;  %v294_v11 = vld [vmem:[#allocation5 + $0x128] sm:$0xff]  ;;  %v1150_v12 = vpack.c.bf16 %v291_v10, %v289_v9  ;;  %v296_v13 = vld [vmem:[#allocation5 + $0x138] sm:$0xff]  ;;  %v293_v14 = vld [vmem:[#allocation5 + $0x120] sm:$0xff]  ;;  %s1501_s29 = sshll.u32 %s1577_s13, 4  ;;  %s1502_s29 = int_to_ptr.vmem [resolvable:$false] %s1501_s29 }
  0x5a   : > { %v295_v15 = vld [vmem:[#allocation5 + $0x130] sm:$0xff]  ;;  %v1152_v16 = vpack.c.bf16 %v296_v13, %v294_v11  ;;  %v298_v17 = vld [vmem:[#allocation5 + $0x148] sm:$0xff]  ;;  %v300_v18 = vld [vmem:[#allocation5 + $0x158] sm:$0xff]  ;;  %s1503_s10 = scalar_lea.vmem %s1502_s29, 512 }
  0x5b   : > { %1149 = vmatprep.subr.bf16.mxu0 %v1148_v8  ;;  %v1154_v19 = vpack.c.bf16 %v295_v15, %v293_v14  ;;  %v1156_v20 = vpack.c.bf16 %v300_v18, %v298_v17  ;;  %v297_v21 = vld [vmem:[#allocation5 + $0x140] sm:$0xff]  ;;  %v299_v22 = vld [vmem:[#allocation5 + $0x150] sm:$0xff]  ;;  %v302_v23 = vld [vmem:[#allocation5 + $0x168] sm:$0xff] }
  0x5c   : > { %1151 = vmatpush1.bf16.msra.mxu0 %v1150_v12  ;;  %v304_v24 = vld [vmem:[#allocation5 + $0x178] sm:$0xff]  ;;  %v1158_v25 = vpack.c.bf16 %v299_v22, %v297_v21  ;;  %v301_v27 = vld [vmem:[#allocation5 + $0x160] sm:$0xff]  ;;  %v303_v28 = vld [vmem:[#allocation5 + $0x170] sm:$0xff] }
  0x5d   : > { %251 = vperm.xlu0 %1421, %v243_v3   ;;  %490 = vperm.xlu1 %1422, %v1135_v5   ;;  %v1160_v26 = vpack.c.bf16 %v304_v24, %v302_v23  ;;  %v306_v29 = vld [vmem:[#allocation5 + $0x188] sm:$0xff]  ;;  %v308_v30 = vld [vmem:[#allocation5 + $0x198] sm:$0xff]  ;;  %v1162_v31 = vpack.c.bf16 %v303_v28, %v301_v27  ;;  %v305_v33 = vld [vmem:[#allocation5 + $0x180] sm:$0xff] }
  0x5e   : > { %1153 = vmatprep.subr.bf16.mxu0 %v1152_v16  ;;  %v1164_v32 = vpack.c.bf16 %v308_v30, %v306_v29  ;;  %v307_v34 = vld [vmem:[#allocation5 + $0x190] sm:$0xff]  ;;  %v310_v35 = vld [vmem:[#allocation5 + $0x1a8] sm:$0xff]  ;;  %v312_v36 = vld [vmem:[#allocation5 + $0x1b8] sm:$0xff] }
  0x5f   : > { %v1166_v37 = vpack.c.bf16 %v307_v34, %v305_v33  ;;  %v1168_v38 = vpack.c.bf16 %v312_v36, %v310_v35  ;;  %v309_v39 = vld [vmem:[#allocation5 + $0x1a0] sm:$0xff]  ;;  %v311_v40 = vld [vmem:[#allocation5 + $0x1b0] sm:$0xff]  ;;  %v314_v41 = vld [vmem:[#allocation5 + $0x1c8] sm:$0xff] }
  0x60   : > { %1155 = vmatpush1.bf16.msra.mxu0 %v1154_v19  ;;  %v316_v42 = vld [vmem:[#allocation5 + $0x1d8] sm:$0xff]  ;;  %v1170_v43 = vpack.c.bf16 %v311_v40, %v309_v39  ;;  %v313_v45 = vld [vmem:[#allocation5 + $0x1c0] sm:$0xff]  ;;  %v315_v46 = vld [vmem:[#allocation5 + $0x1d0] sm:$0xff] }
  0x61   : > { %1157 = vmatprep.subr.bf16.mxu0 %v1156_v20  ;;  %v1172_v44 = vpack.c.bf16 %v316_v42, %v314_v41  ;;  %v318_v47 = vld [vmem:[#allocation5 + $0x1e8] sm:$0xff]  ;;  %v320_v48 = vld [vmem:[#allocation5 + $0x1f8] sm:$0xff]  ;;  %v1174_v49 = vpack.c.bf16 %v315_v46, %v313_v45  ;;  %v317_v51 = vld [vmem:[#allocation5 + $0x1e0] sm:$0xff] }
  0x62   : > { %v1176_v50 = vpack.c.bf16 %v320_v48, %v318_v47  ;;  %v319_v52 = vld [vmem:[#allocation5 + $0x1f0] sm:$0xff]  ;;  %v257_v53 = vld [vmem:[#allocation5 + $0x8] sm:$0xff]  ;;  %v259_v54 = vld [vmem:[#allocation5 + $0x18] sm:$0xff] }
  0x63   : > { %v1178_v55 = vpack.c.bf16 %v319_v52, %v317_v51  ;;  %v1180_v56 = vpack.c.bf16 %v259_v54, %v257_v53  ;;  %v256_v57 = vld [vmem:[#allocation5] sm:$0xff]  ;;  %v258_v58 = vld [vmem:[#allocation5 + $0x10] sm:$0xff]  ;;  %v261_v59 = vld [vmem:[#allocation5 + $0x28] sm:$0xff] }
  0x64   : > { %1159 = vmatpush1.bf16.msra.mxu0 %v1158_v25  ;;  %v263_v60 = vld [vmem:[#allocation5 + $0x38] sm:$0xff]  ;;  %v1767_v61 = vld [vmem:[%s1742_s20] sm:$0xff]  ;;  %v1182_v62 = vpack.c.bf16 %v258_v58, %v256_v57  ;;  %v265_v3 = vld [vmem:[#allocation5 + $0x48] sm:$0xff] }
  0x65   : > { %1161 = vmatprep.subr.bf16.mxu0 %v1160_v26  ;;  %v1184_v63 = vpack.c.bf16 %v263_v60, %v261_v59  ;;  %v260_v0 = vld [vmem:[#allocation5 + $0x20] sm:$0xff]  ;;  %v262_v2 = vld [vmem:[#allocation5 + $0x30] sm:$0xff]  ;;  %v267_v4 = vld [vmem:[#allocation5 + $0x58] sm:$0xff]  ;;  %v235_v46 = vrot.slane %v1767_v61, 7 }
  0x66   : > { %v1186_v5 = vpack.c.bf16 %v262_v2, %v260_v0  ;;  %v1772_v6 = vld [vmem:[%s1742_s20 + $0x8] sm:$0xff]  ;;  %v1188_v7 = vpack.c.bf16 %v267_v4, %v265_v3  ;;  %v264_v8 = vld [vmem:[#allocation5 + $0x40] sm:$0xff]  ;;  %v266_v9 = vld [vmem:[#allocation5 + $0x50] sm:$0xff]  ;;  %s1040_s20 = sshll.u32 %s230_s14, 4  ;;  %s1862_s20 = int_to_ptr.vmem [resolvable:$true] %s1040_s20 }
  0x67   : > { %v269_v10 = vld [vmem:[#allocation5 + $0x68] sm:$0xff]  ;;  %v271_v11 = vld [vmem:[#allocation5 + $0x78] sm:$0xff]  ;;  %v1190_v12 = vpack.c.bf16 %v266_v9, %v264_v8  ;;  %v268_v14 = vld [vmem:[#allocation5 + $0x60] sm:$0xff]  ;;  %v236_v47 = vrot.slane %v1772_v6, 7  ;;  %s1497_s19 = scalar_lea.vmem %s1862_s20, 256  ;;  %p1504_p8 = scmp.lt.s32.totalorder %s1862_s20, %s1502_s29 }
  0x68   : > { %1163 = vmatpush1.bf16.msra.mxu0 %v1162_v31  ;;  %v1192_v13 = vpack.c.bf16 %v271_v11, %v269_v10  ;;  %v270_v15 = vld [vmem:[#allocation5 + $0x70] sm:$0xff]  ;;  %v273_v16 = vld [vmem:[#allocation5 + $0x88] sm:$0xff]  ;;  %v275_v17 = vld [vmem:[#allocation5 + $0x98] sm:$0xff]  ;;  %p1498_p1 = scmp.ne.s32.totalorder %s1862_s20, %s1497_s19  ;;  %p1505_p13 = scmp.lt.s32.totalorder %s1503_s10, %s1497_s19 }
  0x69   : > { %1165 = vmatprep.subr.bf16.mxu0 %v1164_v32  ;;  %v1194_v18 = vpack.c.bf16 %v270_v15, %v268_v14  ;;  %v1196_v19 = vpack.c.bf16 %v275_v17, %v273_v16  ;;  %v272_v20 = vld [vmem:[#allocation5 + $0x80] sm:$0xff]  ;;  %v274_v21 = vld [vmem:[#allocation5 + $0x90] sm:$0xff]  ;;  %v277_v22 = vld [vmem:[#allocation5 + $0xa8] sm:$0xff] }
  0x6a   : > { %v279_v23 = vld [vmem:[#allocation5 + $0xb8] sm:$0xff]  ;;  %v1198_v24 = vpack.c.bf16 %v274_v21, %v272_v20  ;;  %v276_v26 = vld [vmem:[#allocation5 + $0xa0] sm:$0xff]  ;;  %v278_v27 = vld [vmem:[#allocation5 + $0xb0] sm:$0xff]  ;;  %p1499_p4 = pnand %p1498_p1, %p1688_p12  ;;  %p1506_p3 = por %p1505_p13, %p1504_p8 }
  0x6b   : > { %v1200_v25 = vpack.c.bf16 %v279_v23, %v277_v22  ;;  %v281_v28 = vld [vmem:[#allocation5 + $0xc8] sm:$0xff]  ;;  %v283_v29 = vld [vmem:[#allocation5 + $0xd8] sm:$0xff]  ;;  %v1202_v30 = vpack.c.bf16 %v278_v27, %v276_v26  ;;  %v280_v32 = vld [vmem:[#allocation5 + $0xc0] sm:$0xff] }
  0x6c   : > { %1167 = vmatpush1.bf16.msra.mxu0 %v1166_v37  ;;  %v1204_v31 = vpack.c.bf16 %v283_v29, %v281_v28  ;;  %v282_v33 = vld [vmem:[#allocation5 + $0xd0] sm:$0xff]  ;;  %v285_v34 = vld [vmem:[#allocation5 + $0xe8] sm:$0xff]  ;;  %v287_v35 = vld [vmem:[#allocation5 + $0xf8] sm:$0xff]  ;;  %p1500_p6 = pneg %p1499_p4 }
  0x6d   : > { %1169 = vmatprep.subr.bf16.mxu0 %v1168_v38  ;;  %v1206_v36 = vpack.c.bf16 %v282_v33, %v280_v32  ;;  %v1208_v37 = vpack.c.bf16 %v287_v35, %v285_v34  ;;  %v284_v38 = vld [vmem:[#allocation5 + $0xe0] sm:$0xff]  ;;  %v286_v39 = vld [vmem:[#allocation5 + $0xf0] sm:$0xff]  ;;  %v497_v40 = vld [vmem:[#allocation5 + $0x208] sm:$0xff]  ;;  %v475_v33 = vrot.slane %v1767_v61, 1  ;;  %v476_v34 = vrot.slane %v1772_v6, 1 }
  0x6e   : > { %v499_v41 = vld [vmem:[#allocation5 + $0x218] sm:$0xff]  ;;  %v1210_v42 = vpack.c.bf16 %v286_v39, %v284_v38  ;;  %v496_v48 = vld [vmem:[#allocation5 + $0x200] sm:$0xff]  ;;  %v501_v51 = vld [vmem:[#allocation5 + $0x228] sm:$0xff]  ;;  %p1507_p7 = pnand %p1506_p3, %p1500_p6 }
  0x6f   : > { %v503_v52 = vld [vmem:[#allocation5 + $0x238] sm:$0xff]  ;;  %v500_v57 = vld [vmem:[#allocation5 + $0x220] sm:$0xff]  ;;  %v502_v58 = vld [vmem:[#allocation5 + $0x230] sm:$0xff] }
  0x70   : > { %1171 = vmatpush1.bf16.msra.mxu0 %v1170_v43  ;;  %v1212_v43 = vpack.c.bf16 %v499_v41, %v497_v40  ;;  %v505_v60 = vld [vmem:[#allocation5 + $0x248] sm:$0xff]  ;;  %v1218_v0 = vpack.c.bf16 %v502_v58, %v500_v57  ;;  %v504_v4 = vld [vmem:[#allocation5 + $0x240] sm:$0xff]  ;;  %v511_v8 = vld [vmem:[#allocation5 + $0x278] sm:$0xff] }
  0x71   : > { %1173 = vmatprep.subr.bf16.mxu0 %v1172_v44  ;;  %v237_v44 = vlaneseq  ;;  %v508_v11 = vld [vmem:[#allocation5 + $0x260] sm:$0xff]  ;;  %v515_v14 = vld [vmem:[#allocation5 + $0x298] sm:$0xff]  ;;  %v526_v38 = vld [vmem:[#allocation5 + $0x2f0] sm:$0xff] }
  0x72   : > { %v512_v17 = vld [vmem:[#allocation5 + $0x280] sm:$0xff]  ;;  %v519_v20 = vld [vmem:[#allocation5 + $0x2b8] sm:$0xff]  ;;  %v689_v58 = vld [vmem:[#allocation5 + $0x430] sm:$0xff] }
  0x73   : > { %v1776_v45 = vshrl.u32 %v237_v44, 7  ;;  %v516_v23 = vld [vmem:[#allocation5 + $0x2a0] sm:$0xff]  ;;  %v523_v26 = vld [vmem:[#allocation5 + $0x2d8] sm:$0xff] }
  0x74   : > { %1175 = vmatpush1.bf16.msra.mxu0 %v1174_v49  ;;  %v498_v49 = vld [vmem:[#allocation5 + $0x210] sm:$0xff]  ;;  %v520_v29 = vld [vmem:[#allocation5 + $0x2c0] sm:$0xff]  ;;  %v527_v32 = vld [vmem:[#allocation5 + $0x2f8] sm:$0xff] }
  0x75   : > { %1177 = vmatprep.subr.bf16.mxu0 %v1176_v50  ;;  %vm239_vm0 = vcmp.lt.s32.totalorder %v1776_v45, 1  ;;  %v1214_v54 = vpack.c.bf16 %v498_v49, %v496_v48  ;;  %vm477_vm1 = vcmp.lt.s32.totalorder %v1776_v45, 7  ;;  %v686_v48 = vld [vmem:[#allocation5 + $0x418] sm:$0xff]  ;;  %v687_v57 = vld [vmem:[#allocation5 + $0x420] sm:$0xff] }
  0x76   : > { %v241_v50 = vsel %vm239_vm0, %v236_v47, %v235_v46  ;;  %v240_v59 = vsel %vm239_vm0, %v235_v46, %v236_v47  ;;  %v478_v40 = vsel %vm477_vm1, %v475_v33, %v476_v34  ;;  %v479_v44 = vsel %vm477_vm1, %v476_v34, %v475_v33  ;;  %v684_v47 = vld [vmem:[#allocation5 + $0x408] sm:$0xff]  ;;  %v711_v33 = vld [vmem:[#allocation5 + $0x4e0] sm:$0xff]  ;;  %v713_v34 = vld [vmem:[#allocation5 + $0x4f0] sm:$0xff] }
  0x77   : > { %v1244_v49 = vpack.c.bf16 %v686_v48, %v684_v47 }
  0x78   : > { %1179 = vmatpush1.bf16.msra.mxu0 %v1178_v55 }
  0x79   : > { %1181 = vmatprep.subr.bf16.mxu0 %v1180_v56  ;;  %v1216_v56 = vpack.c.bf16 %v503_v52, %v501_v51  ;;  %v685_v51 = vld [vmem:[#allocation5 + $0x410] sm:$0xff]  ;;  %1245 = vmatprep.subr.bf16.mxu1 %v1244_v49 }
  0x7b   : > { %386 = vmatmul.mubr.f32.vlgmr.msra.gmra.mrb[0].mxu0 %v1767_v61 }
  0x7c   : > { %1183 = vmatpush1.bf16.msra.mxu0 %v1182_v62  ;;  %391 = vmatprep.mubr.f32.mxu0 %v1576_v1  ;;  %v507_v62 = vld [vmem:[#allocation5 + $0x258] sm:$0xff] }
  0x7d   : > { %1185 = vmatprep.subr.bf16.mxu0 %v1184_v63  ;;  %v1220_v3 = vpack.c.bf16 %v507_v62, %v505_v60  ;;  %v692_v60 = vld [vmem:[#allocation5 + $0x448] sm:$0xff]  ;;  %v694_v62 = vld [vmem:[#allocation5 + $0x458] sm:$0xff] }
  0x7f   : > { %392 = vmatmul.mubr.f32.gmra.mrb[2].mxu0 %v1772_v6 }
  0x80   : > { %1187 = vmatpush1.bf16.msra.mxu0 %v1186_v5  ;;  %462 = vmatprep.mubr.f32.mxu0 %v1576_v1  ;;  %v506_v5 = vld [vmem:[#allocation5 + $0x250] sm:$0xff] }
  0x81   : > { %1189 = vmatprep.subr.bf16.mxu0 %v1188_v7  ;;  %v509_v7 = vld [vmem:[#allocation5 + $0x268] sm:$0xff]  ;;  %v1222_v9 = vpack.c.bf16 %v506_v5, %v504_v4 }
  0x82   : > { %v1224_v10 = vpack.c.bf16 %v511_v8, %v509_v7  ;;  %v696_v5 = vld [vmem:[#allocation5 + $0x468] sm:$0xff]  ;;  %v698_v7 = vld [vmem:[#allocation5 + $0x478] sm:$0xff] }
  0x83   : > { %v1256_v8 = vpack.c.bf16 %v698_v7, %v696_v5  ;;  %v657_v5 = vld [vmem:[#allocation5 + $0x338] sm:$0xff] }
  0x84   : > { %1191 = vmatpush1.bf16.msra.mxu0 %v1190_v12  ;;  %v510_v12 = vld [vmem:[#allocation5 + $0x270] sm:$0xff] }
  0x85   : > { %1193 = vmatprep.subr.bf16.mxu0 %v1192_v13  ;;  %v513_v13 = vld [vmem:[#allocation5 + $0x288] sm:$0xff]  ;;  %v1226_v15 = vpack.c.bf16 %v510_v12, %v508_v11 }
  0x86   : > { %v1228_v16 = vpack.c.bf16 %v515_v14, %v513_v13  ;;  %v700_v12 = vld [vmem:[#allocation5 + $0x488] sm:$0xff]  ;;  %v702_v13 = vld [vmem:[#allocation5 + $0x498] sm:$0xff] }
  0x87   : > { %v1260_v14 = vpack.c.bf16 %v702_v13, %v700_v12 }
  0x88   : > { %1195 = vmatpush1.bf16.msra.mxu0 %v1194_v18  ;;  %v514_v18 = vld [vmem:[#allocation5 + $0x290] sm:$0xff] }
  0x89   : > { %1197 = vmatprep.subr.bf16.mxu0 %v1196_v19  ;;  %v517_v19 = vld [vmem:[#allocation5 + $0x2a8] sm:$0xff]  ;;  %v1230_v21 = vpack.c.bf16 %v514_v18, %v512_v17 }
  0x8a   : > { %v1232_v22 = vpack.c.bf16 %v519_v20, %v517_v19  ;;  %v704_v18 = vld [vmem:[#allocation5 + $0x4a8] sm:$0xff]  ;;  %v706_v19 = vld [vmem:[#allocation5 + $0x4b8] sm:$0xff] }
  0x8b   : > { %v1264_v20 = vpack.c.bf16 %v706_v19, %v704_v18 }
  0x8c   : > { %1199 = vmatpush1.bf16.msra.mxu0 %v1198_v24  ;;  %v518_v24 = vld [vmem:[#allocation5 + $0x2b0] sm:$0xff] }
  0x8d   : > { %1201 = vmatprep.subr.bf16.mxu0 %v1200_v25  ;;  %v521_v25 = vld [vmem:[#allocation5 + $0x2c8] sm:$0xff]  ;;  %v1234_v27 = vpack.c.bf16 %v518_v24, %v516_v23 }
  0x8e   : > { %v1236_v28 = vpack.c.bf16 %v523_v26, %v521_v25  ;;  %v708_v24 = vld [vmem:[#allocation5 + $0x4c8] sm:$0xff]  ;;  %v710_v25 = vld [vmem:[#allocation5 + $0x4d8] sm:$0xff]  ;;  %v707_v26 = vld [vmem:[#allocation5 + $0x4c0] sm:$0xff] }
  0x90   : > { %1203 = vmatpush1.bf16.msra.mxu0 %v1202_v30  ;;  %v522_v30 = vld [vmem:[#allocation5 + $0x2d0] sm:$0xff] }
  0x91   : > { %1205 = vmatprep.subr.bf16.mxu0 %v1204_v31  ;;  %v525_v31 = vld [vmem:[#allocation5 + $0x2e8] sm:$0xff]  ;;  %v1238_v35 = vpack.c.bf16 %v522_v30, %v520_v29  ;;  %v714_v30 = vld [vmem:[#allocation5 + $0x4f8] sm:$0xff] }
  0x92   : > { %v712_v29 = vld [vmem:[#allocation5 + $0x4e8] sm:$0xff] }
  0x94   : > { %1207 = vmatpush1.bf16.msra.mxu0 %v1206_v36  ;;  %v1240_v36 = vpack.c.bf16 %v527_v32, %v525_v31  ;;  %v1272_v32 = vpack.c.bf16 %v714_v30, %v712_v29  ;;  %v669_v29 = vld [vmem:[#allocation5 + $0x398] sm:$0xff] }
  0x95   : > { %1209 = vmatprep.subr.bf16.mxu0 %v1208_v37  ;;  %v524_v37 = vld [vmem:[#allocation5 + $0x2e0] sm:$0xff] }
  0x96   : > { %v1242_v41 = vpack.c.bf16 %v526_v38, %v524_v37  ;;  %v1274_v37 = vpack.c.bf16 %v713_v34, %v711_v33  ;;  %v668_v33 = vld [vmem:[#allocation5 + $0x390] sm:$0xff]  ;;  %v671_v34 = vld [vmem:[#allocation5 + $0x3a8] sm:$0xff] }
  0x98   : > { %1211 = vmatpush1.bf16.msra.mxu0 %v1210_v42 }
  0x99   : > { %1213 = vmatprep.subr.bf16.mxu0 %v1212_v43 }
  0xd8   : > { %v1783_v53 = vpop.permute.xlu0 %246  ;;  %v1796_v39 = vpop.permute.xlu1 %485 }
  0xd9   : > { %v254_v55 = vmul.f32 %v1783_v53, %v241_v50  ;;  %v493_v42 = vmul.f32 %v1796_v39, %v478_v40  ;;  %v683_v50 = vld [vmem:[#allocation5 + $0x400] sm:$0xff]  ;;  %v617_v40 = vsub.s32 1, %v1776_v45 }
  0xda   : > { %v1246_v52 = vpack.c.bf16 %v685_v51, %v683_v50 }
  0xdb   : > { %463 = vmatmul.mubr.f32.vlgmr.msra.gmra.mrb[0].mxu0 %v254_v55  ;;  %v690_v55 = vld [vmem:[#allocation5 + $0x438] sm:$0xff] }
  0xdc   : > { %1215 = vmatpush1.bf16.msra.mxu0 %v1214_v54  ;;  %v1788_v63 = vpop.permute.xlu0 %251  ;;  %468 = vmatprep.mubr.f32.mxu0 %v1576_v1  ;;  %v1801_v43 = vpop.permute.xlu1 %490  ;;  %v688_v54 = vld [vmem:[#allocation5 + $0x428] sm:$0xff] }
  0xdd   : > { %v255_v2 = vmul.f32 %v1788_v63, %v240_v59  ;;  %1217 = vmatprep.subr.bf16.mxu0 %v1216_v56  ;;  %v494_v46 = vmul.f32 %v1801_v43, %v479_v44  ;;  %1247 = vmatpush1.bf16.msra.mxu1 %v1246_v52  ;;  %v1248_v56 = vpack.c.bf16 %v690_v55, %v688_v54 }
  0xde   : > { %v1250_v59 = vpack.c.bf16 %v689_v58, %v687_v57  ;;  %v613_v57 = vsub.s32 0, %v1776_v45 }
  0xdf   : > { %469 = vmatmul.mubr.f32.gmra.mrb[2].mxu0 %v255_v2  ;;  %1249 = vmatprep.subr.bf16.mxu1 %v1248_v56  ;;  %v691_v2 = vld [vmem:[#allocation5 + $0x440] sm:$0xff] }
  0xe0   : > { %1219 = vmatpush1.bf16.msra.mxu0 %v1218_v0  ;;  %592 = vmatprep.mubr.f32.mxu0 %v1576_v1  ;;  %v1252_v0 = vpack.c.bf16 %v694_v62, %v692_v60 }
  0xe1   : > { %1221 = vmatprep.subr.bf16.mxu0 %v1220_v3  ;;  %1251 = vmatpush1.bf16.msra.mxu1 %v1250_v59  ;;  %v693_v3 = vld [vmem:[#allocation5 + $0x450] sm:$0xff] }
  0xe2   : > { %v1254_v4 = vpack.c.bf16 %v693_v3, %v691_v2  ;;  %1253 = vmatprep.subr.bf16.mxu1 %v1252_v0  ;;  %v650_v2 = vld [vmem:[#allocation5 + $0x300] sm:$0xff]  ;;  %v652_v3 = vld [vmem:[#allocation5 + $0x310] sm:$0xff] }
  0xe4   : > { %1223 = vmatpush1.bf16.msra.mxu0 %v1222_v9  ;;  %v695_v9 = vld [vmem:[#allocation5 + $0x460] sm:$0xff] }
  0xe5   : > { %1225 = vmatprep.subr.bf16.mxu0 %v1224_v10  ;;  %1255 = vmatpush1.bf16.msra.mxu1 %v1254_v4  ;;  %v697_v10 = vld [vmem:[#allocation5 + $0x470] sm:$0xff]  ;;  %v655_v4 = vld [vmem:[#allocation5 + $0x328] sm:$0xff] }
  0xe6   : > { %v1258_v11 = vpack.c.bf16 %v697_v10, %v695_v9  ;;  %1257 = vmatprep.subr.bf16.mxu1 %v1256_v8  ;;  %v1278_v10 = vpack.c.bf16 %v652_v3, %v650_v2  ;;  %v1280_v12 = vpack.c.bf16 %v657_v5, %v655_v4  ;;  %v876_v3 = vld [vmem:[#allocation5 + $0x500] sm:$0xff]  ;;  %v878_v4 = vld [vmem:[#allocation5 + $0x510] sm:$0xff] }
  0xe8   : > { %1227 = vmatpush1.bf16.msra.mxu0 %v1226_v15  ;;  %v699_v15 = vld [vmem:[#allocation5 + $0x480] sm:$0xff] }
  0xe9   : > { %1229 = vmatprep.subr.bf16.mxu0 %v1228_v16  ;;  %1259 = vmatpush1.bf16.msra.mxu1 %v1258_v11  ;;  %v701_v16 = vld [vmem:[#allocation5 + $0x490] sm:$0xff] }
  0xea   : > { %v1262_v17 = vpack.c.bf16 %v701_v16, %v699_v15  ;;  %1261 = vmatprep.subr.bf16.mxu1 %v1260_v14  ;;  %v654_v14 = vld [vmem:[#allocation5 + $0x320] sm:$0xff]  ;;  %v656_v15 = vld [vmem:[#allocation5 + $0x330] sm:$0xff]  ;;  %v659_v16 = vld [vmem:[#allocation5 + $0x348] sm:$0xff] }
  0xeb   : > { %v1282_v19 = vpack.c.bf16 %v656_v15, %v654_v14  ;;  %v882_v14 = vld [vmem:[#allocation5 + $0x530] sm:$0xff] }
  0xec   : > { %1231 = vmatpush1.bf16.msra.mxu0 %v1230_v21  ;;  %v703_v21 = vld [vmem:[#allocation5 + $0x4a0] sm:$0xff] }
  0xed   : > { %1233 = vmatprep.subr.bf16.mxu0 %v1232_v22  ;;  %1263 = vmatpush1.bf16.msra.mxu1 %v1262_v17  ;;  %v705_v22 = vld [vmem:[#allocation5 + $0x4b0] sm:$0xff]  ;;  %v661_v17 = vld [vmem:[#allocation5 + $0x358] sm:$0xff] }
  0xee   : > { %v1266_v23 = vpack.c.bf16 %v705_v22, %v703_v21  ;;  %1265 = vmatprep.subr.bf16.mxu1 %v1264_v20  ;;  %v1284_v20 = vpack.c.bf16 %v661_v17, %v659_v16  ;;  %v658_v21 = vld [vmem:[#allocation5 + $0x340] sm:$0xff]  ;;  %v660_v22 = vld [vmem:[#allocation5 + $0x350] sm:$0xff]  ;;  %v885_v16 = vld [vmem:[#allocation5 + $0x548] sm:$0xff] }
  0xef   : > { %v887_v17 = vld [vmem:[#allocation5 + $0x558] sm:$0xff] }
  0xf0   : > { %1235 = vmatpush1.bf16.msra.mxu0 %v1234_v27  ;;  %v1268_v27 = vpack.c.bf16 %v710_v25, %v708_v24  ;;  %v665_v24 = vld [vmem:[#allocation5 + $0x378] sm:$0xff]  ;;  %v1286_v25 = vpack.c.bf16 %v660_v22, %v658_v21  ;;  %v884_v21 = vld [vmem:[#allocation5 + $0x540] sm:$0xff]  ;;  %v889_v22 = vld [vmem:[#allocation5 + $0x568] sm:$0xff] }
  0xf1   : > { %1237 = vmatprep.subr.bf16.mxu0 %v1236_v28  ;;  %1267 = vmatpush1.bf16.msra.mxu1 %v1266_v23  ;;  %v709_v28 = vld [vmem:[#allocation5 + $0x4d0] sm:$0xff]  ;;  %v663_v23 = vld [vmem:[#allocation5 + $0x368] sm:$0xff] }
  0xf2   : > { %v1270_v31 = vpack.c.bf16 %v709_v28, %v707_v26  ;;  %1269 = vmatprep.subr.bf16.mxu1 %v1268_v27  ;;  %v662_v26 = vld [vmem:[#allocation5 + $0x360] sm:$0xff]  ;;  %v664_v27 = vld [vmem:[#allocation5 + $0x370] sm:$0xff]  ;;  %v667_v28 = vld [vmem:[#allocation5 + $0x388] sm:$0xff] }
  0xf3   : > { %v1290_v30 = vpack.c.bf16 %v664_v27, %v662_v26  ;;  %v890_v26 = vld [vmem:[#allocation5 + $0x570] sm:$0xff]  ;;  %v893_v27 = vld [vmem:[#allocation5 + $0x588] sm:$0xff] }
  0xf4   : > { %1239 = vmatpush1.bf16.msra.mxu0 %v1238_v35  ;;  %v651_v35 = vld [vmem:[#allocation5 + $0x308] sm:$0xff] }
  0xf5   : > { %1241 = vmatprep.subr.bf16.mxu0 %v1240_v36  ;;  %v653_v36 = vld [vmem:[#allocation5 + $0x318] sm:$0xff]  ;;  %1271 = vmatpush1.bf16.msra.mxu1 %v1270_v31  ;;  %v1292_v31 = vpack.c.bf16 %v669_v29, %v667_v28 }
  0xf6   : > { %1273 = vmatprep.subr.bf16.mxu1 %v1272_v32  ;;  %v1276_v38 = vpack.c.bf16 %v653_v36, %v651_v35  ;;  %v666_v32 = vld [vmem:[#allocation5 + $0x380] sm:$0xff]  ;;  %v673_v35 = vld [vmem:[#allocation5 + $0x3b8] sm:$0xff] }
  0xf7   : > { %v1294_v36 = vpack.c.bf16 %v668_v33, %v666_v32  ;;  %v895_v28 = vld [vmem:[#allocation5 + $0x598] sm:$0xff]  ;;  %v897_v32 = vld [vmem:[#allocation5 + $0x5a8] sm:$0xff] }
  0xf8   : > { %1243 = vmatpush1.bf16.msra.mxu0 %v1242_v41  ;;  %v609_v41 = vld [vmem:[%s1907_s2] sm:$0x3]  ;;  %v899_v33 = vld [vmem:[#allocation5 + $0x5b8] sm:$0xff] }
  0xf9   : > { %1275 = vmatpush1.bf16.msra.mxu1 %v1274_v37  ;;  %v614_v59 = vrot.slane %v609_v41, %v613_v57  ;;  %v1296_v37 = vpack.c.bf16 %v673_v35, %v671_v34  ;;  %v1328_v35 = vpack.c.bf16 %v899_v33, %v897_v32 }
  0xfa   : > { %1277 = vmatprep.subr.bf16.mxu1 %v1276_v38  ;;  %v670_v38 = vld [vmem:[#allocation5 + $0x3a0] sm:$0xff] }
  0xfb   : > { %593 = vmatmul.mubr.f32.vlgmr.msra.gmra.mrb[0].mxu0 %v493_v42  ;;  %v618_v42 = vrot.slane %v609_v41, %v617_v40  ;;  %v672_v41 = vld [vmem:[#allocation5 + $0x3b0] sm:$0xff] }
  0xfc   : > { %598 = vmatprep.mubr.f32.mxu0 %v1576_v1 }
  0xff   : > { %599 = vmatmul.mubr.f32.gmra.mrb[2].mxu0 %v494_v46 }
 0x1ce   : > { %v594_v44 = vpop.f32.mrb[0].mxu0 }
 0x1cf   : > { %v596_v46 = vpop.f32.mrb[1].mxu0  ;;  %v621_v60 = vadd.f32 %v614_v59, %v594_v44  ;;  %v677_v44 = vld [vmem:[#allocation5 + $0x3d8] sm:$0xff] }
 0x1d0   : > { %v622_v47 = vadd.f32 %v618_v42, %v596_v46  ;;  %v1298_v46 = vpack.c.bf16 %v672_v41, %v670_v38  ;;  %v901_v38 = vld [vmem:[#allocation5 + $0x5c8] sm:$0xff]  ;;  %v903_v41 = vld [vmem:[#allocation5 + $0x5d8] sm:$0xff] }
 0x1d2   : > { %v1136_v48 = vmul.f32 -1.442695, %v622_v47  ;;  %v600_v49 = vpop.f32.mrb[2].mxu0 }
 0x1d3   : > { %v602_v50 = vpop.f32.mrb[3].mxu0  ;;  %v623_v7 = vadd.f32 %v614_v59, %v600_v49  ;;  %v676_v49 = vld [vmem:[#allocation5 + $0x3d0] sm:$0xff]  ;;  %v877_v59 = vld [vmem:[#allocation5 + $0x508] sm:$0xff] }
 0x1d4   : > { %1423 = vpow2.f32 %v1136_v48  ;;  %v624_v51 = vadd.f32 %v618_v42, %v602_v50  ;;  %v675_v42 = vld [vmem:[#allocation5 + $0x3c8] sm:$0xff]  ;;  %v674_v48 = vld [vmem:[#allocation5 + $0x3c0] sm:$0xff] }
 0x1d5   : > { %v1300_v47 = vpack.c.bf16 %v677_v44, %v675_v42  ;;  %v679_v50 = vld [vmem:[#allocation5 + $0x3e8] sm:$0xff]  ;;  %v1332_v44 = vpack.c.bf16 %v903_v41, %v901_v38 }
 0x1d6   : > { %v1137_v52 = vmul.f32 -1.442695, %v624_v51  ;;  %v681_v51 = vld [vmem:[#allocation5 + $0x3f8] sm:$0xff] }
 0x1d8   : > { %1425 = vpow2.f32 %v1137_v52  ;;  %v1302_v52 = vpack.c.bf16 %v676_v49, %v674_v48  ;;  %v905_v48 = vld [vmem:[#allocation5 + $0x5e8] sm:$0xff]  ;;  %v907_v49 = vld [vmem:[#allocation5 + $0x5f8] sm:$0xff] }
 0x1de   : > { %v1424_v54 = vpop.eup %1423 }
 0x1df   : > { %v631_v55 = vadd.f32 1.0, %v1424_v54  ;;  %v1304_v54 = vpack.c.bf16 %v681_v51, %v679_v50  ;;  %v1336_v51 = vpack.c.bf16 %v907_v49, %v905_v48 }
 0x1e1   : > { %1427 = vrcp.f32 %v631_v55  ;;  %v678_v55 = vld [vmem:[#allocation5 + $0x3e0] sm:$0xff] }
 0x1e2   : > { %v1426_v56 = vpop.eup %1425 }
 0x1e3   : > { %v632_v58 = vadd.f32 1.0, %v1426_v56  ;;  %v680_v56 = vld [vmem:[#allocation5 + $0x3f0] sm:$0xff] }
 0x1e5   : > { %1429 = vrcp.f32 %v632_v58 }
 0x1eb   : > { %v1428_v62 = vpop.eup %1427 }
 0x1ec   : > { %v637_v0 = vmul.f32 %v1428_v62, %v621_v60  ;;  %v879_v60 = vld [vmem:[#allocation5 + $0x518] sm:$0xff] }
 0x1ed   : > { %v1308_v2 = vpack.c.bf16 %v879_v60, %v877_v59 }
 0x1ee   : > { %v639_v8 = vadd.f32 %v637_v0, %v1767_v61  ;;  %v1306_v0 = vpack.c.bf16 %v680_v56, %v678_v55 }
 0x1ef   : > { %v1430_v9 = vpop.eup %1429 }
 0x1f0   : > { %v1817_v11 = vmul.f32 0.70710677, %v639_v8  ;;  %v638_v13 = vmul.f32 %v1430_v9, %v623_v7  ;;  %v881_v7 = vld [vmem:[#allocation5 + $0x528] sm:$0xff]  ;;  %v883_v8 = vld [vmem:[#allocation5 + $0x538] sm:$0xff]  ;;  %v1310_v9 = vpack.c.bf16 %v878_v4, %v876_v3 }
 0x1f2   : > { %780 = vmatmul.mubr.f32.vlgmr.msra.gmra.mrb[0].mxu1 %v1817_v11  ;;  %v640_v18 = vadd.f32 %v638_v13, %v1772_v6  ;;  %v1288_v6 = vpack.c.bf16 %v665_v24, %v663_v23  ;;  %v643_v62 = vrot.slane %v1817_v11, 7  ;;  %v880_v13 = vld [vmem:[#allocation5 + $0x520] sm:$0xff]  ;;  %v891_v23 = vld [vmem:[#allocation5 + $0x578] sm:$0xff]  ;;  %v869_v56 = vrot.slane %v1817_v11, 1 }
 0x1f3   : > { %1279 = vmatpush1.bf16.msra.mxu1 %v1278_v10  ;;  %785 = vmatprep.mubr.f32.mxu1 %v1576_v1 }
 0x1f4   : > { %1281 = vmatprep.subr.bf16.mxu1 %v1280_v12  ;;  %v1822_v61 = vmul.f32 0.70710677, %v640_v18  ;;  %v1312_v12 = vpack.c.bf16 %v883_v8, %v881_v7  ;;  %v1314_v18 = vpack.c.bf16 %v882_v14, %v880_v13 }
 0x1f6   : > { %786 = vmatmul.mubr.f32.gmra.mrb[2].mxu1 %v1822_v61  ;;  %v644_v58 = vrot.slane %v1822_v61, 7  ;;  %v870_v55 = vrot.slane %v1822_v61, 1 }
 0x1f7   : > { %1283 = vmatpush1.bf16.msra.mxu1 %v1282_v19  ;;  %856 = vmatprep.mubr.f32.mxu1 %v1576_v1 }
 0x1f8   : > { %1285 = vmatprep.subr.bf16.mxu1 %v1284_v20  ;;  %v646_v5 = vsel %vm239_vm0, %v644_v58, %v643_v62  ;;  %v645_v15 = vsel %vm239_vm0, %v643_v62, %v644_v58  ;;  %v1316_v20 = vpack.c.bf16 %v887_v17, %v885_v16  ;;  %v871_v59 = vsel %vm477_vm1, %v869_v56, %v870_v55 }
 0x1f9   : > { %v647_v10 = vmul.f32 %v646_v5, %v1783_v53  ;;  %v648_v19 = vmul.f32 %v645_v15, %v1788_v63  ;;  %v886_v53 = vld [vmem:[#allocation5 + $0x550] sm:$0xff]  ;;  %v1324_v63 = vpack.c.bf16 %v895_v28, %v893_v27  ;;  %v873_v60 = vmul.f32 %v871_v59, %v1796_v39 }
 0x1fa   : > { %v1318_v24 = vpack.c.bf16 %v886_v53, %v884_v21  ;;  %v872_v62 = vsel %vm477_vm1, %v870_v55, %v869_v56 }
 0x1fb   : > { %1287 = vmatpush1.bf16.msra.mxu1 %v1286_v25  ;;  %v1320_v25 = vpack.c.bf16 %v891_v23, %v889_v22 }
 0x1fc   : > { %1289 = vmatprep.subr.bf16.mxu1 %v1288_v6  ;;  %v888_v6 = vld [vmem:[#allocation5 + $0x560] sm:$0xff] }
 0x1fd   : > { %v1322_v29 = vpack.c.bf16 %v890_v26, %v888_v6 }
 0x1ff   : > { %1291 = vmatpush1.bf16.msra.mxu1 %v1290_v30  ;;  %v892_v30 = vld [vmem:[#allocation5 + $0x580] sm:$0xff] }
 0x200   : > { %1293 = vmatprep.subr.bf16.mxu1 %v1292_v31  ;;  %v894_v31 = vld [vmem:[#allocation5 + $0x590] sm:$0xff] }
 0x201   : > { %v1326_v34 = vpack.c.bf16 %v894_v31, %v892_v30 }
 0x203   : > { %1295 = vmatpush1.bf16.msra.mxu1 %v1294_v36  ;;  %v896_v36 = vld [vmem:[#allocation5 + $0x5a0] sm:$0xff] }
 0x204   : > { %1297 = vmatprep.subr.bf16.mxu1 %v1296_v37  ;;  %v898_v37 = vld [vmem:[#allocation5 + $0x5b0] sm:$0xff] }
 0x205   : > { %v1330_v42 = vpack.c.bf16 %v898_v37, %v896_v36 }
 0x207   : > { %1299 = vmatpush1.bf16.msra.mxu1 %v1298_v46  ;;  %v900_v46 = vld [vmem:[#allocation5 + $0x5c0] sm:$0xff] }
 0x208   : > { %1301 = vmatprep.subr.bf16.mxu1 %v1300_v47  ;;  %v902_v47 = vld [vmem:[#allocation5 + $0x5d0] sm:$0xff] }
 0x209   : > { %v1334_v50 = vpack.c.bf16 %v902_v47, %v900_v46 }
 0x20b   : > { %1303 = vmatpush1.bf16.msra.mxu1 %v1302_v52  ;;  %v904_v52 = vld [vmem:[#allocation5 + $0x5e0] sm:$0xff] }
 0x20c   : > { %1305 = vmatprep.subr.bf16.mxu1 %v1304_v54  ;;  %v906_v54 = vld [vmem:[#allocation5 + $0x5f0] sm:$0xff] }
 0x20d   : > { %v1338_v58 = vpack.c.bf16 %v906_v54, %v904_v52 }
 0x20f   : > { %1307 = vmatpush1.bf16.msra.mxu1 %v1306_v0  ;;  %v874_v0 = vmul.f32 %v872_v62, %v1801_v43 }
 0x210   : > { %1309 = vmatprep.subr.bf16.mxu1 %v1308_v2  ;;  %v1138_v2 = vld [vmem:[%s1907_s2 + $0x2] sm:$0x3] }
 0x211   : > { %v999_v3 = vrot.slane %v1138_v2, %v617_v40  ;;  %v995_v40 = vrot.slane %v1138_v2, %v613_v57 }
 0x212   : > { %857 = vmatmul.mubr.f32.vlgmr.msra.gmra.mrb[0].mxu1 %v647_v10 }
 0x213   : > { %1311 = vmatpush1.bf16.msra.mxu1 %v1310_v9  ;;  %862 = vmatprep.mubr.f32.mxu1 %v1576_v1 }
 0x214   : > { %1313 = vmatprep.subr.bf16.mxu1 %v1312_v12 }
 0x216   : > { %863 = vmatmul.mubr.f32.gmra.mrb[2].mxu1 %v648_v19 }
 0x217   : > { %1315 = vmatpush1.bf16.msra.mxu1 %v1314_v18  ;;  %972 = vmatprep.mubr.f32.mxu1 %v1576_v1 }
 0x218   : > { %1317 = vmatprep.subr.bf16.mxu1 %v1316_v20 }
 0x21b   : > { %1319 = vmatpush1.bf16.msra.mxu1 %v1318_v24 }
 0x21c   : > { %1321 = vmatprep.subr.bf16.mxu1 %v1320_v25 }
 0x21f   : > { %1323 = vmatpush1.bf16.msra.mxu1 %v1322_v29 }
 0x220   : > { %1325 = vmatprep.subr.bf16.mxu1 %v1324_v63 }
 0x223   : > { %1327 = vmatpush1.bf16.msra.mxu1 %v1326_v34 }
 0x224   : > { %1329 = vmatprep.subr.bf16.mxu1 %v1328_v35 }
 0x227   : > { %1331 = vmatpush1.bf16.msra.mxu1 %v1330_v42 }
 0x228   : > { %1333 = vmatprep.subr.bf16.mxu1 %v1332_v44 }
 0x22b   : > { %1335 = vmatpush1.bf16.msra.mxu1 %v1334_v50 }
 0x22c   : > { %1337 = vmatprep.subr.bf16.mxu1 %v1336_v51 }
 0x22f   : > { %1339 = vmatpush1.bf16.msra.mxu1 %v1338_v58 }
 0x232   : > { %973 = vmatmul.mubr.f32.vlgmr.msra.gmra.mrb[0].mxu1 %v873_v60 }
 0x233   : > { %978 = vmatprep.mubr.f32.mxu1 %v1576_v1 }
 0x236   : > { %979 = vmatmul.mubr.f32.gmra.mrb[2].mxu1 %v874_v0 }
 0x305   : > { %v974_v4 = vpop.f32.mrb[0].mxu1 }
 0x306   : > { %v976_v5 = vpop.f32.mrb[1].mxu1  ;;  %v1002_v15 = vadd.f32 %v995_v40, %v974_v4 }
 0x307   : > { %v1003_v7 = vadd.f32 %v999_v3, %v976_v5 }
 0x309   : > { %v1139_v39 = vmul.f32 -1.442695, %v1003_v7  ;;  %v980_v8 = vpop.f32.mrb[2].mxu1 }
 0x30a   : > { %v982_v9 = vpop.f32.mrb[3].mxu1  ;;  %v1004_v19 = vadd.f32 %v995_v40, %v980_v8 }
 0x30b   : > { %1431 = vpow2.f32 %v1139_v39  ;;  %v1005_v10 = vadd.f32 %v999_v3, %v982_v9 }
 0x30d   : > { %v1140_v12 = vmul.f32 -1.442695, %v1005_v10 }
 0x30f   : > { %1433 = vpow2.f32 %v1140_v12 }
 0x315   : > { %v1432_v1 = vpop.eup %1431 }
 0x316   : > { %v1012_v43 = vadd.f32 1.0, %v1432_v1 }
 0x318   : > { %1435 = vrcp.f32 %v1012_v43 }
 0x319   : > { %v1434_v13 = vpop.eup %1433 }
 0x31a   : > { %v1013_v14 = vadd.f32 1.0, %v1434_v13 }
 0x31c   : > { %1437 = vrcp.f32 %v1013_v14 }
 0x322   : > { %v1436_v16 = vpop.eup %1435 }
 0x323   : > { %v1018_v17 = vmul.f32 %v1436_v16, %v1002_v15 }
 0x325   : > { %v1020_v18 = vadd.f32 %v1018_v17, %v1817_v11 }
 0x326   : > { %v1438_v20 = vpop.eup %1437 }
 0x327   : > { %v1022_v21 = vmul.f32 0.70710677, %v1020_v18  ;;  %v1019_v53 = vmul.f32 %v1438_v20, %v1004_v19 }
 0x329   : > { %v1021_v22 = vadd.f32 %v1019_v53, %v1822_v61  ;;  %1024 = vst [vmem:[%s230_s14] sm:$0xff] %v1022_v21 }
 0x32b   : > { %v1023_v45 = vmul.f32 0.70710677, %v1021_v22 }
 0x32d   : > { %1025 = vst [vmem:[%s230_s14 + $0x8] sm:$0xff] %v1023_v45 }
 0x32e   : > { %1510 = shalt.err (!%p1507_p7)
}
 0x32f   : > { %s1511_s6 = scalar_lea.hbm %s1860_s21, 256  ;;  %s1515_s26 = scalar_lea.hbm %s1909_s4, 1024 }
 0x330   : > { %p1512_p9 = scmp.ne.s32.totalorder %s1860_s21, %s1511_s6  ;;  %p1516_p5 = scmp.lt.u32.totalorder %s1860_s21, %s1909_s4 }
 0x331   : > { %p1517_p10 = scmp.lt.u32.totalorder %s1515_s26, %s1511_s6  ;;  %p1519_p1 = scmp.lt.u32.totalorder %s1511_s6, %s1860_s21 }
 0x332   : > { %p1513_p11 = pnand %p1512_p9, %p1688_p12 }
 0x333   : > { %p1518_p2 = por %p1517_p10, %p1516_p5 }
 0x334   : > { %p1514_p0 = pneg %p1513_p11 }
 0x335   : > { %p1520_p4 = por %p1519_p1, %p1518_p2 }
 0x337   : > { %p1521_p6 = pnand %p1520_p4, %p1514_p0 }
 0x339   : > { %1524 = shalt.err (!%p1521_p6)
}
 0x33a   : > { %s1578_s11 = smov 128   ;;  %s1579_s14 = smov 8  }
 0x33b   : > { %1362 = dma.vmem_to_hbm [thread:$0]  (%p1688_p12), %s1862_s20, 256, %s1860_s21, %s1027_s28, %s1578_s11, %s1578_s11, %s1579_s14  }
 0x33c PF: > { %p1379_p8 = scmp.ge.s32.totalorder %s1567_s18, 2  ;;  %s1055_s23 = sand.u32 1, %s1555_s15  }
 0x33d   : > { %p1924_p13 = scmp.ne.s32.totalorder %s1914_s22, 0  ;;  %s1056_s9 = scalar_lea.sflag [#allocation4], %s1055_s23 }
 0x33f   : > { %p1373_p3 = pnand %p1379_p8, %p1924_p13 }
 0x341   : > { %1550 = dma.done.wait (!%p1373_p3), %s1056_s9, 256  }
 0x342   : > { %1552 = vsyncadd (!%p1373_p3), %s1056_s9, 4294967040  ;;  %p18_p7 = scmp.ge.s32.totalorder %s1658_s27, 6   ;;  %s1925_s15 = smov %s1559_s16 }
 0x343   : > { %s1926_s16 = smov %s1563_s17  ;;  %s1927_s17 = smov %s1684_s24 }
 0x344   : > { %s1928_s18 = smov %s1658_s27  ;;  %20 = sbr.rel (!%p18_p7) target bundleno = 6 (0x6), region = 92 }
 0x34b   :  { %1061 = vsyncpa [#allocation3], 1 }
 0x34c   :  { %1063 = vsyncpa [#allocation3 + $0x1], 1 }
 0x34d   :  { %1064 = vsyncpa [#allocation6], 1 }
 0x34e   :  { %1065 = vsyncpa [#allocation4], 1 }
 0x34f   :  { %1067 = vsyncpa [#allocation4 + $0x1], 1 }

</bundles_post_ra>
